<compile_context>
chip_gen: v6e
topology: v6e:2x2x1
jax: 0.10.0
libtpu: 0.0.40
codegen_flags: <defaults>
</compile_context>

<pallas_src>
import jax
import jax.numpy as jnp
from jax.experimental import pallas as pl
from jax.experimental.pallas import tpu as pltpu

_LANES = 1024        # lane-dense last dim (multiple of 128)
_TILE_ROWS = 256     # ~1 MiB f32 per input tile; fits default scoped VMEM on v5e/v6e/v7x


def _make_dropout_kernel(dropout_p: float):
    """Kernel body: out = x * (keep ? 1/(1-p) : 0), keep from int threshold."""
    # 31-bit integer threshold: rnd uniform in [0, 2^31), keep iff rnd >= p * 2^31
    threshold = int(round(dropout_p * (1 << 31)))
    scale = 1.0 / (1.0 - dropout_p)

    def kernel(x_ref, rnd_ref, o_ref):
        x = x_ref[...]
        keep = rnd_ref[...] >= jnp.int32(threshold)
        factor = jnp.where(keep,
                           jnp.asarray(scale, dtype=x.dtype),
                           jnp.asarray(0, dtype=x.dtype))
        o_ref[...] = (x * factor).astype(o_ref.dtype)

    return kernel


def position_encoding_forward(x, *, d_model, dropout_p=0.1, training=True, rng_key=None):
    """Pallas equivalent of PositionEncoding.forward(x).

    NOTE: the reference forward computes `x + pe[...]` but discards the result,
    so the PE term is intentionally NOT applied here (output == dropout(x)).
    """
    assert x.shape[-1] == d_model, "last dim of x must equal d_model"

    # Eval mode / p == 0: dropout is the identity -> no kernel, no HBM traffic.
    if (not training) or dropout_p == 0.0:
        return x
    if dropout_p >= 1.0:
        return jnp.zeros_like(x)
    if rng_key is None:
        rng_key = jax.random.PRNGKey(0)

    orig_shape = x.shape
    n = x.size

    # Lane-dense 2D layout: (rows, _LANES), tiled over rows.
    rows = -(-n // _LANES)
    if rows <= _TILE_ROWS:
        tile_rows = rows                      # block == full first dim (always legal)
    else:
        tile_rows = _TILE_ROWS                # multiple of 8
        rows = -(-rows // tile_rows) * tile_rows  # round up so the grid divides evenly
    padded = rows * _LANES

    xf = x.reshape(-1)
    if padded != n:
        xf = jnp.pad(xf, (0, padded - n))
    x2 = xf.reshape(rows, _LANES)

    # Uniform 31-bit random integers (generated outside the kernel; XLA fuses this).
    bits = jax.random.bits(rng_key, (rows, _LANES), dtype=jnp.uint32)
    rnd = (bits >> 1).astype(jnp.int32)       # values in [0, 2^31)

    kernel = _make_dropout_kernel(dropout_p)
    grid = (rows // tile_rows,)
    spec = pl.BlockSpec((tile_rows, _LANES), lambda i: (i, 0))

    out2 = pl.pallas_call(
        kernel,
        out_shape=jax.ShapeDtypeStruct((rows, _LANES), x.dtype),
        grid=grid,
        in_specs=[spec, spec],
        out_specs=spec,
        compiler_params=pltpu.CompilerParams(
            dimension_semantics=("parallel",),   # independent tiles -> shard across TCs
        ),
    )(x2, rnd)

    out = out2.reshape(-1)
    if padded != n:
        out = out[:n]
    return out.reshape(orig_shape)


def _check_dropout(out, x, p):
    kept = out != 0.0
    assert out.shape == x.shape and out.dtype == x.dtype
    assert jnp.allclose(
        jnp.where(kept, out, 0.0),
        jnp.where(kept, x / (1.0 - p), 0.0),
        rtol=1e-5, atol=1e-6,
    ), "kept elements must equal x / (1 - p); dropped must be 0"


if __name__ == "__main__":
    key = jax.random.PRNGKey(0)
    kx, kd, kx2, kd2 = jax.random.split(key, 4)

    # Small shape matching the module: batch=2, seq=8, d_model=32.
    B, S, D = 2, 8, 32
    p = 0.1
    x = jax.random.normal(kx, (B, S, D), dtype=jnp.float32)

    # Training-mode forward (dropout active).
    out_train = position_encoding_forward(x, d_model=D, dropout_p=p, training=True, rng_key=kd)
    jax.block_until_ready(out_train)
    _check_dropout(out_train, x, p)

    # Eval-mode forward: identity on x (no kernel launched).
    out_eval = position_encoding_forward(x, d_model=D, dropout_p=p, training=False, rng_key=kd)
    jax.block_until_ready(out_eval)
    assert jnp.allclose(out_eval, x), "eval-mode output must equal x"

    # A second shape that exercises padding + a multi-tile grid.
    B2, S2, D2 = 3, 333, 384
    x2 = jax.random.normal(kx2, (B2, S2, D2), dtype=jnp.float32)
    out2 = position_encoding_forward(x2, d_model=D2, dropout_p=p, training=True, rng_key=kd2)
    jax.block_until_ready(out2)
    _check_dropout(out2, x2, p)

    # TODO(synk): reference forward discards `x + pe`; PE is intentionally not applied.
    print("KERNEL_OK")
</pallas_src>

<mosaic_0001>
module attributes {stable_mosaic.version = 11 : i64} {
  func.func @kernel(%arg0: i32, %arg1: memref<1x1024xf32, #tpu.memory_space<vmem>>, %arg2: memref<1x1024xi32, #tpu.memory_space<vmem>>, %arg3: memref<1x1024xf32, #tpu.memory_space<vmem>>) attributes {dimension_semantics = [#tpu.dimension_semantics<parallel>], iteration_bounds = array<i64: 1>, scalar_prefetch = 0 : i64, scratch_operands = 0 : i64, tpu.core_type = #tpu.core_type<tc>, window_params = [{transform_indices = @transform_0, window_bounds = array<i64: 1, 1024>}, {transform_indices = @transform_1, window_bounds = array<i64: 1, 1024>}, {transform_indices = @transform_2, window_bounds = array<i64: 1, 1024>}]} {
    %c0 = arith.constant 0 : index
    %c0_0 = arith.constant 0 : index
    %0 = vector.load %arg1[%c0, %c0_0] : memref<1x1024xf32, #tpu.memory_space<vmem>>, vector<1x1024xf32>
    %c0_1 = arith.constant 0 : index
    %c0_2 = arith.constant 0 : index
    %1 = vector.load %arg2[%c0_1, %c0_2] : memref<1x1024xi32, #tpu.memory_space<vmem>>, vector<1x1024xi32>
    %c214748365_i32 = arith.constant 214748365 : i32
    %2 = vector.broadcast %c214748365_i32 : i32 to vector<1x1024xi32>
    %3 = arith.cmpi sge, %1, %2 : vector<1x1024xi32>
    %cst = arith.constant 1.11111116 : f32
    %cst_3 = arith.constant 0.000000e+00 : f32
    %4 = vector.broadcast %cst : f32 to vector<1x1024xf32>
    %5 = vector.broadcast %cst_3 : f32 to vector<1x1024xf32>
    %6 = arith.select %3, %4, %5 : vector<1x1024xi1>, vector<1x1024xf32>
    %7 = arith.mulf %0, %6 : vector<1x1024xf32>
    %c0_4 = arith.constant 0 : index
    %c0_5 = arith.constant 0 : index
    %8 = vector.load %arg3[%c0_4, %c0_5] : memref<1x1024xf32, #tpu.memory_space<vmem>>, vector<1x1024xf32>
    tpu.vector_store %arg3[%c0_4, %c0_5], %7 {strides = array<i32>} : memref<1x1024xf32, #tpu.memory_space<vmem>>, vector<1x1024xf32>,
    return
  }
  func.func @transform_0(%arg0: i32) -> (i32, i32) {
    %c0_i32 = arith.constant 0 : i32
    %c0_i32_0 = arith.constant 0 : i32
    return %arg0, %c0_i32 : i32, i32
  }
  func.func @transform_1(%arg0: i32) -> (i32, i32) {
    %c0_i32 = arith.constant 0 : i32
    %c0_i32_0 = arith.constant 0 : i32
    return %arg0, %c0_i32 : i32, i32
  }
  func.func @transform_2(%arg0: i32) -> (i32, i32) {
    %c0_i32 = arith.constant 0 : i32
    %c0_i32_0 = arith.constant 0 : i32
    return %arg0, %c0_i32 : i32, i32
  }
}

</mosaic_0001>

<bundles_post_ra>
// kernel: tpu_custom_call.1
= control target key start
LH: loop header
LB: loop body
LE: loop exit
PB: predicated region body
PF: predicated region fallthrough
CT: control target
= control target key end

     0   :  { %7 = vsyncpa [#allocation3], 0  ;;  %s156_s0 = inlined_call_operand.hbm [shape: f32[1,1024], index: 0, kind: input, shape index: {}]   ;;  %s157_s1 = inlined_call_operand.hbm [shape: s32[1,1024], index: 1, kind: input, shape index: {}]   ;;  %s158_s2 = inlined_call_operand.hbm [shape: f32[1,1024], index: 2, kind: output, shape index: {}]  }
   0x1   :  { %8 = vsyncpa [#allocation6], 0 }
   0x2   :  { %9 = vsyncpa [#allocation4], 0  ;;  %s128_s9 = smov [#allocation2]   ;;  %s129_s11 = smov [#allocation5]  }
   0x3   :  { %s16_s10 = sshll.u32 %s128_s9, 4  ;;  %s26_s12 = sshll.u32 %s129_s11, 4  ;;  %s17_s10 = int_to_ptr.vmem [resolvable:$true] %s16_s10  ;;  %s27_s12 = int_to_ptr.vmem [resolvable:$true] %s26_s12 }
   0x4   :  { %s70_s13 = scalar_lea.vmem %s17_s10, 128  ;;  %p75_p1 = scmp.lt.s32.totalorder %s17_s10, %s17_s10 }
   0x5   :  { %p71_p0 = scmp.ne.s32.totalorder %s17_s10, %s70_s13  ;;  %p76_p2 = scmp.lt.s32.totalorder %s70_s13, %s70_s13 }
   0x7   :  { %p77_p3 = por %p76_p2, %p75_p1 }
   0x9   :  { %p78_p4 = pnand %p77_p3, %p71_p0 }
   0xb   :  { %81 = shalt.err (!%p78_p4)
}
   0xc   :  { %19 = dma.hbm_to_vmem [thread:$0]  %s156_s0, 128, %s17_s10, [#allocation3]  }
   0xd   :  { %s90_s16 = scalar_lea.vmem %s27_s12, 128  ;;  %p95_p6 = scmp.lt.s32.totalorder %s27_s12, %s27_s12 }
   0xe   :  { %p91_p5 = scmp.ne.s32.totalorder %s27_s12, %s90_s16  ;;  %p96_p7 = scmp.lt.s32.totalorder %s90_s16, %s90_s16 }
  0x10   :  { %p97_p8 = por %p96_p7, %p95_p6 }
  0x12   :  { %p98_p9 = pnand %p97_p8, %p91_p5 }
  0x14   :  { %101 = shalt.err (!%p98_p9)
}
  0x15   :  { %29 = dma.hbm_to_vmem [thread:$0]  %s157_s1, 128, %s27_s12, [#allocation6]  }
  0x16   :  { %122 = dma.done.wait [#allocation3], 128  }
  0x17   :  { %123 = vsyncadd [#allocation3], 4294967168 }
  0x18   :  { %124 = dma.done.wait [#allocation6], 128  }
  0x19   :  { %125 = vsyncadd [#allocation6], 4294967168  ;;  %v36_v0 = vld [vmem:[#allocation2] sm:$0xff]  ;;  %v37_v1 = vld [vmem:[#allocation5] sm:$0xff]  ;;  %s130_s19 = smov [#allocation7]   ;;  %v131_v2 = vmov 0.0  }
  0x1a   :  { %s48_s20 = sshll.u32 %s130_s19, 4  ;;  %vm38_vm0 = vcmp.ge.s32.totalorder %v37_v1, 214748365  ;;  %s49_s20 = int_to_ptr.vmem [resolvable:$true] %s48_s20 }
  0x1b   :  { %v39_v3 = vsel %vm38_vm0, 1.1111112, %v131_v2  ;;  %s102_s0 = scalar_lea.vmem %s49_s20, 128  ;;  %p107_p11 = scmp.lt.s32.totalorder %s49_s20, %s49_s20 }
  0x1c   :  { %v40_v4 = vmul.f32 %v39_v3, %v36_v0  ;;  %p103_p10 = scmp.ne.s32.totalorder %s49_s20, %s102_s0  ;;  %p108_p12 = scmp.lt.s32.totalorder %s102_s0, %s102_s0 }
  0x1e   :  { %41 = vst [vmem:[#allocation7] sm:$0xff] %v40_v4  ;;  %p109_p13 = por %p108_p12, %p107_p11 }
  0x20   :  { %p110_p0 = pnand %p109_p13, %p103_p10 }
  0x22   :  { %113 = shalt.err (!%p110_p0)
}
  0x23   :  { %51 = dma.vmem_to_hbm [thread:$0]  %s49_s20, 128, %s158_s2, [#allocation4]  }
  0x24   :  { %126 = dma.done.wait [#allocation4], 128  }
  0x25   :  { %127 = vsyncadd [#allocation4], 4294967168 }
  0x26   :  { %55 = vsyncpa [#allocation3], 1 }
  0x27   :  { %56 = vsyncpa [#allocation6], 1 }
  0x28   :  { %57 = vsyncpa [#allocation4], 1 }

</bundles_post_ra>
